<compile_context>
chip_gen: v5e
topology: v5e:2x2
jax: 0.10.0
libtpu: 0.0.40
codegen_flags: <defaults>
</compile_context>

<pallas_src>
import math

import jax
import jax.numpy as jnp
from jax.experimental import pallas as pl
from jax.experimental.pallas import tpu as pltpu


# ----------------------------------------------------------------------------
# Generation-gated tiling tables
# ----------------------------------------------------------------------------
def _vmem_capacity_bytes():
    try:
        return int(pltpu.get_tpu_info().vmem_capacity_bytes)
    except Exception:
        return 64 * 1024 * 1024          # conservative fallback (v7x-sized)


_VMEM_CAP = _vmem_capacity_bytes()
_BIG_VMEM = _VMEM_CAP >= 96 * 1024 * 1024            # v5e/v6e: 128 MiB, v7x: 64 MiB
_VMEM_LIMIT = (96 if _BIG_VMEM else 48) * 1024 * 1024  # explicit scoped-VMEM limit

_M_TILES = (1024, 960, 768, 512, 384, 320, 256, 192, 160, 128,
            96, 64, 48, 32, 24, 16, 8)                              # sublane
_N_TILES = (512, 384, 256, 128)                                     # lane
_N_TILES_GEMV = (1024, 768, 512, 384, 256, 128)                     # M == 1 path
_K_TILES = (2048, 1536, 1024, 768, 512, 384, 256, 128)              # v7x-safe
_K_TILES_BIG = (4096, 3072, 2048, 1536, 1024, 768, 512, 384, 256, 128)  # v5e/v6e
_K_TILES_GEMV = (4096, 3072, 2048, 1536, 1024, 768, 512, 384, 256, 128)


def _pick_tile(dim, candidates):
    """Pick the tile that minimizes padding, then maximizes tile size."""
    best_key, best = None, candidates[-1]
    for c in candidates:
        key = ((-dim) % c, -c)
        if best_key is None or key < best_key:
            best_key, best = key, c
    return best


def _select_tiles(M, N, K, *, n_ops, out_bytes, extra_xg=False,
                  m_cands=_M_TILES, n_cands=_N_TILES, k_cands=None):
    """Pick (tm, tn, tk) minimizing padding, subject to a double-buffered VMEM budget."""
    if k_cands is None:
        k_cands = _K_TILES_BIG if _BIG_VMEM else _K_TILES
    tm = _pick_tile(M, m_cands)
    tn = _pick_tile(N, n_cands)
    budget = int(_VMEM_LIMIT * 0.9)

    def vmem_est(tk_):
        b = 2 * tm * tk_ * 2                 # x block, bf16, double-buffered
        b += 2 * n_ops * tk_ * tn * 2        # weight block(s), bf16, double-buffered
        b += 2 * tm * tn * out_bytes         # out block, double-buffered
        b += n_ops * tm * tn * 4             # f32 accumulators (scratch)
        if extra_xg:
            b += 2 * tm * tn * 2             # gate residual input
        return b

    best_key, best_tk = None, k_cands[-1]
    for c in k_cands:
        if vmem_est(c) > budget:
            continue
        key = ((-K) % c, -c)
        if best_key is None or key < best_key:
            best_key, best_tk = key, c
    return tm, tn, best_tk


def _pad2(x, r, c):
    R, C = x.shape
    pr, pc = (-R) % r, (-C) % c
    if pr == 0 and pc == 0:
        return x
    return jnp.pad(x, ((0, pr), (0, pc)))


def _pad3(x, r, c):
    _, R, C = x.shape
    pr, pc = (-R) % r, (-C) % c
    if pr == 0 and pc == 0:
        return x
    return jnp.pad(x, ((0, 0), (0, pr), (0, pc)))


def _compiler_params(sem):
    return pltpu.CompilerParams(dimension_semantics=sem,
                                vmem_limit_bytes=_VMEM_LIMIT)


# ----------------------------------------------------------------------------
# Pallas kernels
# ----------------------------------------------------------------------------
def _matmul_kernel(act):
    """Tiled matmul, bf16 operands, f32 accumulate, fused bias + activation."""
    def kernel(x_ref, w_ref, b_ref, o_ref, acc_ref):
        @pl.when(pl.program_id(2) == 0)
        def _():
            acc_ref[...] = jnp.zeros_like(acc_ref)

        acc_ref[...] += jnp.dot(x_ref[...], w_ref[...],
                                preferred_element_type=jnp.float32)

        @pl.when(pl.program_id(2) == pl.num_programs(2) - 1)
        def _():
            y = acc_ref[...] + b_ref[...]
            if act == "tanh":
                y = jnp.tanh(y)
            elif act == "tanh_softplus":
                sp = jnp.maximum(y, 0.0) + jnp.log1p(jnp.exp(-jnp.abs(y)))
                y = jnp.tanh(sp)
            o_ref[...] = y.astype(o_ref.dtype)
    return kernel


def _wavenet_gate_matmul_kernel(x_ref, w_ref, b_ref, xg_ref, o_ref,
                                y_acc, g_acc, f_acc):
    """Fused conv2|gate|filter (3 accumulating dots) + WaveNet gate epilogue."""
    k = pl.program_id(2)

    @pl.when(k == 0)
    def _():
        y_acc[...] = jnp.zeros_like(y_acc)
        g_acc[...] = jnp.zeros_like(g_acc)
        f_acc[...] = jnp.zeros_like(f_acc)

    x = x_ref[...]
    y_acc[...] += jnp.dot(x, w_ref[0], preferred_element_type=jnp.float32)
    g_acc[...] += jnp.dot(x, w_ref[1], preferred_element_type=jnp.float32)
    f_acc[...] += jnp.dot(x, w_ref[2], preferred_element_type=jnp.float32)

    @pl.when(k == pl.num_programs(2) - 1)
    def _():
        y = y_acc[...] + b_ref[0]
        g = g_acc[...] + b_ref[1]
        f = f_acc[...] + b_ref[2]
        xg = xg_ref[...].astype(jnp.float32)
        o_ref[...] = (jnp.tanh(f) * y + (1.0 - jnp.tanh(g)) * xg).astype(o_ref.dtype)


def _matmul_tanh_colmean_kernel(m_true, tm):
    """tanh(x @ w + b) reduced to a column mean, fused into the matmul.

    NOTE: the output block is resident across BOTH the i (rows) and k
    (contraction) grid axes — partial sums are accumulated directly into the
    VMEM output block.  This is only correct because the grid order is
    (j, i, k) with i/k marked "arbitrary" and the out index_map independent of
    i and k.  Do not reorder the grid or mark i as parallel.
    """
    inv_m = 1.0 / float(m_true)

    def kernel(x_ref, w_ref, b_ref, o_ref, acc_ref):
        i = pl.program_id(1)
        k = pl.program_id(2)
        last_k = k == pl.num_programs(2) - 1

        @pl.when(k == 0)
        def _():
            acc_ref[...] = jnp.zeros_like(acc_ref)

        acc_ref[...] += jnp.dot(x_ref[...], w_ref[...],
                                preferred_element_type=jnp.float32)

        @pl.when(jnp.logical_and(last_k, i == 0))
        def _():
            o_ref[...] = jnp.zeros_like(o_ref)

        @pl.when(last_k)
        def _():
            y = jnp.tanh(acc_ref[...] + b_ref[...])
            row = jax.lax.broadcasted_iota(jnp.int32, (tm, 1), 0) + i * tm
            y = jnp.where(row < m_true, y, 0.0)      # mask padded rows
            o_ref[...] += jnp.sum(y, axis=0, keepdims=True)

        @pl.when(jnp.logical_and(last_k, i == pl.num_programs(1) - 1))
        def _():
            o_ref[...] = o_ref[...] * inv_m
    return kernel


# ----------------------------------------------------------------------------
# Pallas wrappers
# ----------------------------------------------------------------------------
def pallas_linear(x, w, b, act="none", out_dtype=jnp.float32):
    """act(x @ w + b); x:(M,K), w:(K,N), b:(N,). bf16 operands / f32 accumulate."""
    M, K = x.shape
    N = w.shape[1]
    x = x.astype(jnp.bfloat16)
    w = w.astype(jnp.bfloat16)
    b = b.astype(jnp.float32).reshape(1, -1)

    gemv = M <= 8                      # encoder / extractor single-row GEMV chain
    tm, tn, tk = _select_tiles(
        M, N, K, n_ops=1, out_bytes=jnp.dtype(out_dtype).itemsize,
        n_cands=_N_TILES_GEMV if gemv else _N_TILES,
        k_cands=_K_TILES_GEMV if gemv else None)

    xp = _pad2(x, tm, tk)
    wp = _pad2(w, tk, tn)
    bp = _pad2(b, 1, tn)
    Mp, Kp = xp.shape
    Np = wp.shape[1]

    out = pl.pallas_call(
        _matmul_kernel(act),
        out_shape=jax.ShapeDtypeStruct((Mp, Np), out_dtype),
        grid_spec=pltpu.PrefetchScalarGridSpec(
            num_scalar_prefetch=0,
            grid=(Mp // tm, Np // tn, Kp // tk),
            in_specs=[pl.BlockSpec((tm, tk), lambda i, j, k: (i, k)),
                      pl.BlockSpec((tk, tn), lambda i, j, k: (k, j)),
                      pl.BlockSpec((1, tn), lambda i, j, k: (0, j))],
            out_specs=pl.BlockSpec((tm, tn), lambda i, j, k: (i, j)),
            scratch_shapes=[pltpu.VMEM((tm, tn), jnp.float32)]),
        compiler_params=_compiler_params(("parallel", "parallel", "arbitrary")),
    )(xp, wp, bp)
    if (Mp, Np) != (M, N):
        out = out[:M, :N]
    return out


def pallas_wavenet_gate_matmul(x1, w3, b3, out_dtype=jnp.bfloat16):
    """Fused WaveNet gate: [y|g|f] = x1 @ w3 + b3, return tanh(f)*y+(1-tanh(g))*x1."""
    M, K = x1.shape
    N = w3.shape[2]
    x16 = x1.astype(jnp.bfloat16)
    w3 = w3.astype(jnp.bfloat16)
    b3 = b3.astype(jnp.float32)

    gemv = M <= 8
    tm, tn, tk = _select_tiles(
        M, N, K, n_ops=3, out_bytes=jnp.dtype(out_dtype).itemsize, extra_xg=True,
        n_cands=_N_TILES_GEMV if gemv else _N_TILES,
        k_cands=_K_TILES_GEMV if gemv else None)

    xp = _pad2(x16, tm, tk)
    xg = _pad2(x16, tm, tn)          # gate residual input (K == N == channels here)
    wp = _pad3(w3, tk, tn)
    bp = _pad3(b3, 1, tn)
    Mp, Kp = xp.shape
    Np = wp.shape[2]

    out = pl.pallas_call(
        _wavenet_gate_matmul_kernel,
        out_shape=jax.ShapeDtypeStruct((Mp, Np), out_dtype),
        grid_spec=pltpu.PrefetchScalarGridSpec(
            num_scalar_prefetch=0,
            grid=(Mp // tm, Np // tn, Kp // tk),
            in_specs=[pl.BlockSpec((tm, tk), lambda i, j, k: (i, k)),
                      pl.BlockSpec((3, tk, tn), lambda i, j, k: (0, k, j)),
                      pl.BlockSpec((3, 1, tn), lambda i, j, k: (0, 0, j)),
                      pl.BlockSpec((tm, tn), lambda i, j, k: (i, j))],
            out_specs=pl.BlockSpec((tm, tn), lambda i, j, k: (i, j)),
            scratch_shapes=[pltpu.VMEM((tm, tn), jnp.float32)] * 3),
        compiler_params=_compiler_params(("parallel", "parallel", "arbitrary")),
    )(xp, wp, bp, xg)
    if (Mp, Np) != (M, N):
        out = out[:M, :N]
    return out


def pallas_linear_tanh_colmean(x, w, b):
    """mean over rows of tanh(x @ w + b) -> (1, N), reduction fused into the GEMM."""
    M, K = x.shape
    N = w.shape[1]
    x = x.astype(jnp.bfloat16)
    w = w.astype(jnp.bfloat16)
    b = b.astype(jnp.float32).reshape(1, -1)

    tm, tn, tk = _select_tiles(M, N, K, n_ops=1, out_bytes=4)
    xp = _pad2(x, tm, tk)
    wp = _pad2(w, tk, tn)
    bp = _pad2(b, 1, tn)
    Mp, Kp = xp.shape
    Np = wp.shape[1]

    out = pl.pallas_call(
        _matmul_tanh_colmean_kernel(M, tm),
        out_shape=jax.ShapeDtypeStruct((1, Np), jnp.float32),
        grid_spec=pltpu.PrefetchScalarGridSpec(
            num_scalar_prefetch=0,
            # Grid order (j, i, k): output block resident over i and k (see kernel
            # docstring) — i and k MUST stay "arbitrary".
            grid=(Np // tn, Mp // tm, Kp // tk),
            in_specs=[pl.BlockSpec((tm, tk), lambda j, i, k: (i, k)),
                      pl.BlockSpec((tk, tn), lambda j, i, k: (k, j)),
                      pl.BlockSpec((1, tn), lambda j, i, k: (0, j))],
            out_specs=pl.BlockSpec((1, tn), lambda j, i, k: (0, j)),
            scratch_shapes=[pltpu.VMEM((tm, tn), jnp.float32)]),
        compiler_params=_compiler_params(("parallel", "arbitrary", "arbitrary")),
    )(xp, wp, bp)
    if Np != N:
        out = out[:, :N]
    return out


# ----------------------------------------------------------------------------
# Model pieces
# ----------------------------------------------------------------------------
def _torch_standardize(x):
    """(x - x.mean()) / x.std() with torch's default unbiased std."""
    mu = jnp.mean(x)
    var = jnp.sum((x - mu) ** 2) / (x.size - 1)
    return (x - mu) / jnp.sqrt(var)


def wavenet_block(x, p):
    """Causal WaveNetBlock (kernel=3, dilation=1) on an (L, C) slab."""
    # TODO(synk): in-kernel tap folding of the im2col was considered but skipped
    # (bf16 sublane-offset relayout risk); the im2col below stays a bf16 concat.
    L, c_in = x.shape
    x16 = x.astype(jnp.bfloat16)
    xp = jnp.concatenate([jnp.zeros((2, c_in), jnp.bfloat16), x16], axis=0)  # causal pad
    xcol = jnp.concatenate([xp[0:L], xp[1:L + 1], xp[2:L + 2]], axis=1)      # bf16 im2col
    x1 = pallas_linear(xcol, p["w1"], p["b1"], act="tanh",
                       out_dtype=jnp.bfloat16)                               # conv1 + tanh
    return pallas_wavenet_gate_matmul(x1, p["w3"], p["b3"],
                                      out_dtype=jnp.bfloat16)                # gate epilogue


def flow_apply(z, mode):
    # TODO(synk): FlowModel is undefined in the reference (checkpoint-only); identity placeholder.
    return z


def encode(p, cfg, target_audio, eps):
    A, D = cfg["audio"], cfg["latent"]
    x = target_audio.reshape(1, A)                                 # NCL (1, A, 1) -> (L=1, C=A)
    x = pallas_linear(x, p["enc_conv1_w"], p["enc_conv1_b"], out_dtype=jnp.bfloat16)
    x = wavenet_block(x, p["enc_wavenet"])
    x = pallas_linear(x, p["enc_conv2_w"], p["enc_conv2_b"], out_dtype=jnp.bfloat16)
    x = pallas_linear(x, p["enc_conv3_w"], p["enc_conv3_b"], out_dtype=jnp.bfloat16)  # (1, 2D)
    mulv = pallas_linear(x, p["enc_mulv_w"], p["enc_mulv_b"])      # fused block-diag mu|logvar
    z_q_mu = mulv[:, :D]
    z_q_log_var = mulv[:, D:]
    lv = jnp.clip(z_q_log_var, -10.0, 10.0)
    z_q = z_q_mu + eps * jnp.exp(0.5 * lv)                         # reparameterize
    return z_q[None], z_q_mu[None], z_q_log_var[None]              # each (1, 1, D)


def extractor(p, cfg, tone_feat, text_feat):
    # TODO(synk): ToneFeat/TextFeat extractor bodies are undefined (checkpoint-only);
    # their D-dim outputs are taken directly as inputs.
    D = cfg["latent"]
    fused_in = jnp.concatenate([tone_feat, text_feat], axis=-1).reshape(1, 2 * D)
    low = pallas_linear(fused_in, p["low_fusion_w"], p["low_fusion_b"],
                        out_dtype=jnp.bfloat16)
    # 4 heads (tone_mu | tone_logvar | text_mu | text_logvar) fused into one matmul
    heads = pallas_linear(low, p["heads_w"], p["heads_b"], out_dtype=jnp.bfloat16)   # (1, 4D)
    # high_level_fusion | high_fusion_mu | high_fusion_std fused into one matmul
    high = pallas_linear(heads, p["high_all_w"], p["high_all_b"])                    # (1, 3D) f32
    z_p = high[:, :D]
    z_p_mu = high[:, D:2 * D]
    z_p_log_var = high[:, 2 * D:]
    return (z_p.reshape(1, 1, D), z_p_mu.reshape(1, 1, D),
            z_p_log_var.reshape(1, 1, D))


def decode(p, cfg, z, spk):
    D, A = cfg["latent"], cfg["audio"]
    K1, C1 = cfg["ct1_k"], cfg["ct1_out"]
    z = _torch_standardize(z)
    zvec = z.reshape(D)
    sb = pallas_linear(spk, p["dec_scale_bias_w"], p["dec_scale_bias_b"])    # fused scale|bias, f32
    scale, bias = sb[:, :D], sb[:, D:]
    # (L=D, C=D): x[f, s] = z[f]*scale[s] + bias[s] (matches the permute/broadcast in torch)
    x = zvec[:, None] * scale + bias                                         # (D, D)
    x = pallas_linear(x, p["pre_conv1_w"], p["pre_conv1_b"],
                      act="tanh_softplus", out_dtype=jnp.bfloat16)
    # ConvTranspose1d(k=K1, s=K1): matmul then interleave time
    y = pallas_linear(x, p["ct1_w"], p["ct1_b"], out_dtype=jnp.bfloat16)     # (D, K1*C1)
    x = y.reshape(D, K1, C1).reshape(D * K1, C1)
    x = wavenet_block(x, p["dec_wavenet1"])
    x = pallas_linear(x, p["ct2_w"], p["ct2_b"], out_dtype=jnp.bfloat16)
    x = wavenet_block(x, p["dec_wavenet2"])
    m = pallas_linear_tanh_colmean(x, p["dec_conv_w"], p["dec_conv_b"])      # (1, A) f32
    return m.reshape(1, A, 1)                                                # NCL, length 1


def audio_vae_flow_forward(p, cfg, target_audio, tone_feat, text_feat,
                           reference_tone_feature, eps):
    """Train-mode forward of AudioVAE_Flow."""
    z_q, z_q_mu, z_q_log_var = encode(p, cfg, target_audio, eps)
    z_p, z_p_mu, z_p_log_var = extractor(p, cfg, tone_feat, text_feat)
    z_q = _torch_standardize(z_q)
    z_p = _torch_standardize(z_p)
    z_p_head = flow_apply(z_q, mode="forward")
    z_q_head = flow_apply(z_p, mode="inverse")
    generated_audio = decode(p, cfg, z_q_head, reference_tone_feature)
    return (z_q, z_p,
            jnp.transpose(z_q_head, (0, 2, 1)),
            jnp.transpose(z_p_head, (0, 2, 1)),
            z_q_mu, z_q_log_var, z_p_mu, z_p_log_var,
            jnp.transpose(generated_audio, (0, 2, 1)))


# ----------------------------------------------------------------------------
# Configs & deterministic synthetic parameters (weights stored in bf16)
# ----------------------------------------------------------------------------
# Original module widths (kept for reference — same code path, just bigger dims).
CFG_FULL = dict(audio=4096, enc_h=2048, enc_h2=1024, latent=192, low=512,
                pre=320, ct1_out=160, ct1_k=5, dec_h1=512, ct2_out=1024)
# Width-scaled demo config so the script also runs quickly under interpret mode.
CFG_SMALL = dict(audio=256, enc_h=128, enc_h2=64, latent=32, low=64,
                 pre=48, ct1_out=32, ct1_k=5, dec_h1=64, ct2_out=96)


def make_params(cfg, seed=42):
    keys = iter(jax.random.split(jax.random.PRNGKey(seed), 256))

    def nrm(shape, scale):
        return jax.random.normal(next(keys), shape, jnp.float32) * scale

    def linear_p(din, dout):  # also used for k=1 Conv1d in (L, C) layout
        w = nrm((din, dout), 1.0 / math.sqrt(din)).astype(jnp.bfloat16)
        b = nrm((dout,), 0.01)
        return w, b

    def conv3_p(cin, cout):
        # PyTorch Conv1d weight (cout, cin, 3) -> im2col matmul weight (3*cin, cout)
        w = nrm((cout, cin, 3), 1.0 / math.sqrt(3 * cin))
        b = nrm((cout,), 0.01)
        return jnp.transpose(w, (2, 1, 0)).reshape(3 * cin, cout).astype(jnp.bfloat16), b

    def wavenet_p(cin, cout):
        w1, b1 = conv3_p(cin, cout)
        wc, bc = linear_p(cout, cout)   # conv2 (k=1)
        wg, bg = linear_p(cout, cout)   # gate
        wf, bf = linear_p(cout, cout)   # filter
        return dict(w1=w1, b1=b1,
                    w3=jnp.stack([wc, wg, wf], axis=0),                 # (3, cout, cout) bf16
                    b3=jnp.stack([bc, bg, bf], axis=0)[:, None, :])     # (3, 1, cout) f32

    def convT_p(cin, cout, k):
        # PyTorch ConvTranspose1d weight (cin, cout, k), stride == k (no overlap)
        w = nrm((cin, cout, k), 1.0 / math.sqrt(cin))
        b = nrm((cout,), 0.01)
        return (jnp.transpose(w, (0, 2, 1)).reshape(cin, k * cout).astype(jnp.bfloat16),
                jnp.tile(b, k))

    A, H, H2, D = cfg["audio"], cfg["enc_h"], cfg["enc_h2"], cfg["latent"]
    LOW, PRE = cfg["low"], cfg["pre"]
    C1, K1, W1, C2 = cfg["ct1_out"], cfg["ct1_k"], cfg["dec_h1"], cfg["ct2_out"]

    p = {}
    # extractor fusion heads (ToneFeat/TextFeat bodies are TODO'd above)
    p["low_fusion_w"], p["low_fusion_b"] = linear_p(2 * D, LOW)
    head_w, head_b = zip(*[linear_p(LOW, D) for _ in range(4)])   # tone_mu|tone_lv|text_mu|text_lv
    p["heads_w"] = jnp.concatenate(head_w, axis=1)
    p["heads_b"] = jnp.concatenate(head_b, axis=0)
    hf_w, hf_b = linear_p(4 * D, D)        # high_level_fusion
    hm_w, hm_b = linear_p(2 * D, D)        # high_fusion_mu  on [tone_mu, text_mu]
    hs_w, hs_b = linear_p(2 * D, D)        # high_fusion_std on [tone_logvar, text_logvar]
    hm_full = jnp.zeros((4 * D, D), jnp.bfloat16)
    hm_full = hm_full.at[0:D].set(hm_w[0:D]).at[2 * D:3 * D].set(hm_w[D:2 * D])
    hs_full = jnp.zeros((4 * D, D), jnp.bfloat16)
    hs_full = hs_full.at[D:2 * D].set(hs_w[0:D]).at[3 * D:4 * D].set(hs_w[D:2 * D])
    p["high_all_w"] = jnp.concatenate([hf_w, hm_full, hs_full], axis=1)
    p["high_all_b"] = jnp.concatenate([hf_b, hm_b, hs_b], axis=0)
    # encoder
    p["enc_conv1_w"], p["enc_conv1_b"] = linear_p(A, H)
    p["enc_wavenet"] = wavenet_p(H, H)
    p["enc_conv2_w"], p["enc_conv2_b"] = linear_p(H, H2)
    p["enc_conv3_w"], p["enc_conv3_b"] = linear_p(H2, 2 * D)
    mu_w, mu_b = linear_p(D, D)
    lv_w, lv_b = linear_p(D, D)
    mlv = jnp.zeros((2 * D, 2 * D), jnp.bfloat16)
    p["enc_mulv_w"] = mlv.at[:D, :D].set(mu_w).at[D:, D:].set(lv_w)   # block-diag mu|logvar
    p["enc_mulv_b"] = jnp.concatenate([mu_b, lv_b], axis=0)
    # decoder
    sw, sb_ = linear_p(D, D)
    bw, bb_ = linear_p(D, D)
    p["dec_scale_bias_w"] = jnp.concatenate([sw, bw], axis=1)          # fused scale|bias
    p["dec_scale_bias_b"] = jnp.concatenate([sb_, bb_], axis=0)
    p["pre_conv1_w"], p["pre_conv1_b"] = linear_p(D, PRE)
    p["ct1_w"], p["ct1_b"] = convT_p(PRE, C1, K1)
    p["dec_wavenet1"] = wavenet_p(C1, W1)
    p["ct2_w"], p["ct2_b"] = convT_p(W1, C2, 1)
    p["dec_wavenet2"] = wavenet_p(C2, A)
    p["dec_conv_w"], p["dec_conv_b"] = linear_p(A, A)
    return p


if __name__ == "__main__":
    cfg = CFG_SMALL
    params = make_params(cfg, seed=42)

    key = jax.random.PRNGKey(0)
    k1, k2, k3, k4, k5 = jax.random.split(key, 5)
    A, D = cfg["audio"], cfg["latent"]
    # target_audio: (batch=1, time=1, audio) — time must be 1 (encode squeezes it);
    # batch must be 1 for decode's broadcast against the speaker features.
    target_audio = jax.random.normal(k1, (1, 1, A), jnp.float32)
    tone_feat = jax.random.normal(k2, (1, 1, D), jnp.float32)       # ToneFeat output stand-in
    text_feat = jax.random.normal(k3, (1, 1, D), jnp.float32)       # TextFeat output stand-in
    reference_tone_feature = jax.random.normal(k4, (1, D), jnp.float32)
    eps = jax.random.normal(k5, (1, D), jnp.float32)                # deterministic randn_like

    outs = audio_vae_flow_forward(params, cfg, target_audio, tone_feat, text_feat,
                                  reference_tone_feature, eps)
    outs = jax.block_until_ready(outs)

    expected = [(1, 1, D), (1, 1, D), (1, D, 1), (1, D, 1),
                (1, 1, D), (1, 1, D), (1, 1, D), (1, 1, D), (1, 1, A)]
    assert [tuple(o.shape) for o in outs] == expected, [o.shape for o in outs]
    assert all(bool(jnp.all(jnp.isfinite(o.astype(jnp.float32)))) for o in outs)
    print("KERNEL_OK")
</pallas_src>

<mosaic_0001>
module attributes {stable_mosaic.version = 11 : i64} {
  func.func @kernel(%arg0: i32, %arg1: i32, %arg2: i32, %arg3: memref<8x256xbf16, #tpu.memory_space<vmem>>, %arg4: memref<256x128xbf16, #tpu.memory_space<vmem>>, %arg5: memref<1x128xf32, #tpu.memory_space<vmem>>, %arg6: memref<8x128xbf16, #tpu.memory_space<vmem>>, %arg7: memref<8x128xf32, #tpu.memory_space<vmem>>) attributes {dimension_semantics = [#tpu.dimension_semantics<parallel>, #tpu.dimension_semantics<parallel>, #tpu.dimension_semantics<arbitrary>], iteration_bounds = array<i64: 1, 1, 1>, scalar_prefetch = 0 : i64, scratch_operands = 1 : i64, tpu.core_type = #tpu.core_type<tc>, window_params = [{transform_indices = @transform_0, window_bounds = array<i64: 8, 256>}, {transform_indices = @transform_1, window_bounds = array<i64: 256, 128>}, {transform_indices = @transform_2, window_bounds = array<i64: 1, 128>}, {transform_indices = @transform_3, window_bounds = array<i64: 8, 128>}]} {
    %c0_i32 = arith.constant 0 : i32
    %0 = arith.cmpi eq, %arg2, %c0_i32 : i32
    %1 = arith.extui %0 : i1 to i32
    %c0_i32_0 = arith.constant 0 : i32
    %2 = arith.cmpi ne, %1, %c0_i32_0 : i32
    scf.if %2 {
      %cst_10 = arith.constant 0.000000e+00 : f32
      %12 = vector.broadcast %cst_10 : f32 to vector<8x128xf32>
      %c0_11 = arith.constant 0 : index
      %c0_12 = arith.constant 0 : index
      %13 = vector.load %arg7[%c0_11, %c0_12] : memref<8x128xf32, #tpu.memory_space<vmem>>, vector<8x128xf32>
      tpu.vector_store %arg7[%c0_11, %c0_12], %12 {strides = array<i32>} : memref<8x128xf32, #tpu.memory_space<vmem>>, vector<8x128xf32>,
    } else {
    }
    %c0 = arith.constant 0 : index
    %c0_1 = arith.constant 0 : index
    %3 = vector.load %arg7[%c0, %c0_1] : memref<8x128xf32, #tpu.memory_space<vmem>>, vector<8x128xf32>
    %c0_2 = arith.constant 0 : index
    %c0_3 = arith.constant 0 : index
    %4 = vector.load %arg3[%c0_2, %c0_3] : memref<8x256xbf16, #tpu.memory_space<vmem>>, vector<8x256xbf16>
    %c0_4 = arith.constant 0 : index
    %c0_5 = arith.constant 0 : index
    %5 = vector.load %arg4[%c0_4, %c0_5] : memref<256x128xbf16, #tpu.memory_space<vmem>>, vector<256x128xbf16>
    %cst = arith.constant dense<0.000000e+00> : vector<8x128xf32>
    %6 = tpu.matmul %4, %5, %cst {dimension_numbers = #tpu.dot_dimension_numbers<[1], [0], [0], [1], [0, 0, 1, 1], [], []>} : vector<8x256xbf16>, vector<256x128xbf16>, vector<8x128xf32> -> vector<8x128xf32>
    %7 = arith.addf %3, %6 : vector<8x128xf32>
    %c0_6 = arith.constant 0 : index
    %c0_7 = arith.constant 0 : index
    %8 = vector.load %arg7[%c0_6, %c0_7] : memref<8x128xf32, #tpu.memory_space<vmem>>, vector<8x128xf32>
    tpu.vector_store %arg7[%c0_6, %c0_7], %7 {strides = array<i32>} : memref<8x128xf32, #tpu.memory_space<vmem>>, vector<8x128xf32>,
    %c0_i32_8 = arith.constant 0 : i32
    %9 = arith.cmpi eq, %arg2, %c0_i32_8 : i32
    %10 = arith.extui %9 : i1 to i32
    %c0_i32_9 = arith.constant 0 : i32
    %11 = arith.cmpi ne, %10, %c0_i32_9 : i32
    scf.if %11 {
      %c0_10 = arith.constant 0 : index
      %c0_11 = arith.constant 0 : index
      %12 = vector.load %arg7[%c0_10, %c0_11] : memref<8x128xf32, #tpu.memory_space<vmem>>, vector<8x128xf32>
      %c0_12 = arith.constant 0 : index
      %c0_13 = arith.constant 0 : index
      %13 = vector.load %arg5[%c0_12, %c0_13] : memref<1x128xf32, #tpu.memory_space<vmem>>, vector<1x128xf32>
      %14 = vector.broadcast %13 : vector<1x128xf32> to vector<8x128xf32>
      %15 = arith.addf %12, %14 : vector<8x128xf32>
      %16 = arith.truncf %15 : vector<8x128xf32> to vector<8x128xbf16>
      %c0_14 = arith.constant 0 : index
      %c0_15 = arith.constant 0 : index
      %17 = vector.load %arg6[%c0_14, %c0_15] : memref<8x128xbf16, #tpu.memory_space<vmem>>, vector<8x128xbf16>
      tpu.vector_store %arg6[%c0_14, %c0_15], %16 {strides = array<i32>} : memref<8x128xbf16, #tpu.memory_space<vmem>>, vector<8x128xbf16>,
    } else {
    }
    return
  }
  func.func @transform_0(%arg0: i32, %arg1: i32, %arg2: i32) -> (i32, i32) {
    %c0_i32 = arith.constant 0 : i32
    return %arg0, %arg2 : i32, i32
  }
  func.func @transform_1(%arg0: i32, %arg1: i32, %arg2: i32) -> (i32, i32) {
    %c0_i32 = arith.constant 0 : i32
    return %arg2, %arg1 : i32, i32
  }
  func.func @transform_2(%arg0: i32, %arg1: i32, %arg2: i32) -> (i32, i32) {
    %c0_i32 = arith.constant 0 : i32
    %c0_i32_0 = arith.constant 0 : i32
    return %c0_i32, %arg1 : i32, i32
  }
  func.func @transform_3(%arg0: i32, %arg1: i32, %arg2: i32) -> (i32, i32) {
    %c0_i32 = arith.constant 0 : i32
    return %arg0, %arg1 : i32, i32
  }
}

</mosaic_0001>

<bundles_post_ra>
// kernel: tpu_custom_call.1
= control target key start
LH: loop header
LB: loop body
LE: loop exit
PB: predicated region body
PF: predicated region fallthrough
CT: control target
= control target key end

     0   :  { %8 = vsyncpa [#allocation4], 0  ;;  %s445_s0 = inlined_call_operand.hbm [shape: bf16[8,256], index: 0, kind: input, shape index: {}]   ;;  %s446_s1 = inlined_call_operand.hbm [shape: bf16[256,128], index: 1, kind: input, shape index: {}]   ;;  %s447_s2 = inlined_call_operand.vmem [shape: f32[1,128], index: 2, kind: input, shape index: {}]   ;;  %s448_s3 = inlined_call_operand.hbm [shape: bf16[8,128], index: 3, kind: output, shape index: {}]  }
   0x1   :  { %9 = vsyncpa [#allocation7], 0 }
   0x2   :  { %10 = vsyncpa [#allocation5], 0  ;;  %s16_s14 = sshll.u32 %s445_s0, 4  ;;  %s408_s15 = smov [#allocation3]   ;;  %s17_s14 = int_to_ptr.hbm [resolvable:$true] %s16_s14 }
   0x3   :  { %s18_s16 = sshll.u32 %s408_s15, 4  ;;  %s26_s19 = sshll.u32 %s446_s1, 4  ;;  %s19_s16 = int_to_ptr.vmem [resolvable:$true] %s18_s16  ;;  %s27_s19 = int_to_ptr.hbm [resolvable:$true] %s26_s19 }
   0x4   :  { %21 = dma.hbm_to_vmem [thread:$0]  %s17_s14, 128, %s19_s16, [#allocation4]  }
   0x5   :  { %s409_s20 = smov [#allocation6]   ;;  %s410_s22 = smov 64  }
   0x6   :  { %s28_s21 = sshll.u32 %s409_s20, 4  ;;  %s411_s23 = smov 4   ;;  %s29_s21 = int_to_ptr.vmem [resolvable:$true] %s28_s21 }
   0x7   :  { %34 = dma.hbm_to_vmem [thread:$0]  %s27_s19, 2048, %s29_s21, [#allocation7], %s410_s22, %s410_s22, %s411_s23  }
   0x8   :  { %402 = dma.done.wait [#allocation4], 128  }
   0x9   :  { %403 = vsyncadd [#allocation4], 4294967168 }
   0xa   :  { %404 = dma.done.wait [#allocation7], 2048  }
   0xb   :  { %405 = vsyncadd [#allocation7], 4294965248  ;;  %v315_v0 = vld [vmem:[#allocation6 + $0x38] sm:$0xff]  ;;  %v314_v2 = vld [vmem:[#allocation6 + $0x30] sm:$0xff]  ;;  %s412_s24 = smov [#allocation8]   ;;  %s233_s28 = sshll.u32 %s448_s3, 4  ;;  %s234_s28 = int_to_ptr.hbm [resolvable:$true] %s233_s28 }
   0xc   :  { %v323_v1 = vld [vmem:[#allocation6 + $0x78] sm:$0xff]  ;;  %187 = vmatpush.bf16.msra.mxu0 %v315_v0  ;;  %v322_v3 = vld [vmem:[#allocation6 + $0x70] sm:$0xff]  ;;  %v313_v4 = vld [vmem:[#allocation6 + $0x28] sm:$0xff]  ;;  %s231_s25 = sshll.u32 %s412_s24, 4  ;;  %s232_s25 = int_to_ptr.vmem [resolvable:$true] %s231_s25 }
   0xd   :  { %200 = vmatpush.bf16.msra.mxu1 %v323_v1  ;;  %v321_v5 = vld [vmem:[#allocation6 + $0x68] sm:$0xff]  ;;  %v312_v6 = vld [vmem:[#allocation6 + $0x20] sm:$0xff]  ;;  %v311_v8 = vld [vmem:[#allocation6 + $0x18] sm:$0xff] }
   0xe   :  { %v320_v7 = vld [vmem:[#allocation6 + $0x60] sm:$0xff]  ;;  %v319_v9 = vld [vmem:[#allocation6 + $0x58] sm:$0xff]  ;;  %v310_v10 = vld [vmem:[#allocation6 + $0x10] sm:$0xff] }
   0xf   :  { %v318_v11 = vld [vmem:[#allocation6 + $0x50] sm:$0xff]  ;;  %v309_v12 = vld [vmem:[#allocation6 + $0x8] sm:$0xff]  ;;  %v51_v14 = vld [vmem:[#allocation3] sm:$0xff] }
  0x10   :  { %188 = vmatpush.bf16.msra.mxu0 %v314_v2  ;;  %v317_v13 = vld [vmem:[#allocation6 + $0x48] sm:$0xff]  ;;  %v85_v15 = vunpack.c.l.b16 %v51_v14  ;;  %v86_v16 = vunpack.c.h.b16 %v51_v14  ;;  %v308_v17 = vld [vmem:[#allocation6] sm:$0xff]  ;;  %v329_v21 = vld [vmem:[%s447_s2] ss:$0 sm:$0xff] }
  0x11   :  { %201 = vmatpush.bf16.msra.mxu1 %v322_v3  ;;  %v316_v18 = vld [vmem:[#allocation6 + $0x40] sm:$0xff] }
  0x12   :  { %v87_v19 = vpack.c.b16 %v85_v15, %v85_v15  ;;  %v88_v20 = vpack.c.b16 %v86_v16, %v86_v16 }
  0x14   :  { %189 = vmatpush.bf16.msra.mxu0 %v313_v4 }
  0x15   :  { %202 = vmatpush.bf16.msra.mxu1 %v321_v5 }
  0x18   :  { %190 = vmatpush.bf16.msra.mxu0 %v312_v6 }
  0x19   :  { %203 = vmatpush.bf16.msra.mxu1 %v320_v7 }
  0x1c   :  { %191 = vmatpush.bf16.msra.mxu0 %v311_v8 }
  0x1d   :  { %204 = vmatpush.bf16.msra.mxu1 %v319_v9 }
  0x20   :  { %192 = vmatpush.bf16.msra.mxu0 %v310_v10 }
  0x21   :  { %205 = vmatpush.bf16.msra.mxu1 %v318_v11 }
  0x24   :  { %193 = vmatpush.bf16.msra.mxu0 %v309_v12 }
  0x25   :  { %206 = vmatpush.bf16.msra.mxu1 %v317_v13 }
  0x28   :  { %194 = vmatpush.bf16.msra.mxu0 %v308_v17 }
  0x29   :  { %207 = vmatpush.bf16.msra.mxu1 %v316_v18 }
  0x2b   :  { %195 = vmatmul.bf16.vlgmr.msra.gmra.mxu0 %v87_v19 }
  0x2c   :  { %208 = vmatmul.bf16.vlgmr.msra.gmra.mxu1 %v88_v20 }
  0xa8   :  { %v196_v22 = vpop.f32.mrf.mxu0 }
  0xa9   :  { %v209_v23 = vpop.f32.mrf.mxu1 }
  0xaa   :  { %v210_v24 = vadd.f32 %v209_v23, %v196_v22 }
  0xac   :  { %v223_v25 = vadd.f32 %v329_v21, %v210_v24 }
  0xae   :  { %v224_v26 = vpack.c.bf16 %v223_v25, %v223_v25 }
  0xb0   :  { %225 = vst [vmem:[#allocation8] sm:$0xf] %v224_v26  ;;  %v198_v27 = vpop.f32.mrf.mxu0 }
  0xb1   :  { %v211_v28 = vpop.f32.mrf.mxu1  ;;  %236 = dma.vmem_to_hbm [thread:$0]  %s232_s25, 64, %s234_s28, [#allocation5]  }
  0xb2   :  { %406 = dma.done.wait [#allocation5], 64  }
  0xb3   :  { %407 = vsyncadd [#allocation5], 4294967232 }
  0xb4   :  { %241 = vsyncpa [#allocation4], 1 }
  0xb5   :  { %242 = vsyncpa [#allocation7], 1 }
  0xb6   :  { %243 = vsyncpa [#allocation5], 1 }

</bundles_post_ra>
